<compile_context>
chip_gen: v7x
topology: tpu7x:2x2x1
jax: 0.10.0
libtpu: 0.0.40
codegen_flags: <defaults>
</compile_context>

<pallas_src>
import jax
import jax.numpy as jnp
from jax import lax
from jax.experimental import pallas as pl
from jax.experimental.pallas import tpu as pltpu

# ---- small, module-consistent shapes -------------------------------------
S = 4           # sentences per document
S_PAD = 8       # sentence rows padded to one sublane group
W = 6           # words per sentence
VOCAB = 50      # vocabulary size
E = 16          # embedding dim
H_WORD = 8      # word-encoder GRU hidden size
H_SENT = 16     # sentence-encoder GRU hidden size (must equal 2 * H_WORD)
C = 5           # num classes
assert H_SENT == 2 * H_WORD

GW = 6 * H_WORD       # gate width of the stacked (both-direction) word GRU = 48
GS = 6 * H_SENT       # gate width of the stacked (both-direction) sent GRU = 96
TOK_ROWS = W * S_PAD  # word-major token rows per document (padded) = 48
OUT_COLS = 128        # lane-dense output tile width


def _r8(n):
    return ((n + 7) // 8) * 8


# ---- row offsets inside the single packed weight slab (8-aligned, static) --
# Slab width = GS (96 lanes), f32.
_S_EMB = 0                               # (VOCAB, E)
_S_WIH_W = _S_EMB + _r8(VOCAB)           # 56   (E, GW)
_S_WHH_W = _S_WIH_W + _r8(E)             # 72   (2*H_WORD, GW) block-diagonal
_S_BI_W = _S_WHH_W + _r8(2 * H_WORD)     # 88   (1, GW)
_S_BH_W = _S_BI_W + 8                    # 96   (1, GW)
_S_WIH_S = _S_BH_W + 8                   # 104  (H_SENT, GS)
_S_BI_S = _S_WIH_S + _r8(H_SENT)         # 120  (1, GS)
_S_BH_S = _S_BI_S + 8                    # 128  (1, GS)
_S_WA_W = _S_BH_S + 8                    # 136  (2*H_WORD, 2*H_WORD)  word_attention.T
_S_WA_B = _S_WA_W + _r8(2 * H_WORD)      # 152  (1, 2*H_WORD)
_S_SA_W = _S_WA_B + 8                    # 160  (2*H_SENT, 2*H_SENT)  sent_attention.T
_S_SA_B = _S_SA_W + _r8(2 * H_SENT)      # 192  (1, 2*H_SENT)
_S_DO_W = _S_SA_B + 8                    # 200  (2*H_SENT, C)         dense_out.T
_S_DO_B = _S_DO_W + _r8(2 * H_SENT)      # 232  (1, C)
SLAB_ROWS = _S_DO_B + 8                  # 240


# ---- shared GRU cell math for the pure-JAX reference (PyTorch r,z,n order) --
def _gru_cell(x, h, w_ih, w_hh, b_ih, b_hh):
    hdim = h.shape[-1]
    gi = jnp.dot(x, w_ih.T, preferred_element_type=jnp.float32) + b_ih
    gh = jnp.dot(h, w_hh.T, preferred_element_type=jnp.float32) + b_hh
    i_r, i_z, i_n = gi[:, :hdim], gi[:, hdim:2 * hdim], gi[:, 2 * hdim:]
    h_r, h_z, h_n = gh[:, :hdim], gh[:, hdim:2 * hdim], gh[:, 2 * hdim:]
    r = jax.nn.sigmoid(i_r + h_r)
    z = jax.nn.sigmoid(i_z + h_z)
    n = jnp.tanh(i_n + r * h_n)
    return (1.0 - z) * n + z * h


# ---- the single fused kernel (one grid step == one document) -----------------
def _han_kernel(doc_ref, slab_ref, out_ref):
    # ---- weight loads: static slices of the VMEM-resident packed slab --------
    emb_tab = slab_ref[_S_EMB:_S_EMB + VOCAB, 0:E]
    wih_w = slab_ref[_S_WIH_W:_S_WIH_W + E, 0:GW]
    whh_w = slab_ref[_S_WHH_W:_S_WHH_W + 2 * H_WORD, 0:GW]
    bi_w = slab_ref[_S_BI_W:_S_BI_W + 1, 0:GW]
    bh_w = slab_ref[_S_BH_W:_S_BH_W + 1, 0:GW]
    wih_s = slab_ref[_S_WIH_S:_S_WIH_S + H_SENT, 0:GS]
    bi_s = slab_ref[_S_BI_S:_S_BI_S + 1, 0:GS]
    bh_s = slab_ref[_S_BH_S:_S_BH_S + 1, 0:GS]
    wa_wT = slab_ref[_S_WA_W:_S_WA_W + 2 * H_WORD, 0:2 * H_WORD]
    wa_b = slab_ref[_S_WA_B:_S_WA_B + 1, 0:2 * H_WORD]
    sa_wT = slab_ref[_S_SA_W:_S_SA_W + 2 * H_SENT, 0:2 * H_SENT]
    sa_b = slab_ref[_S_SA_B:_S_SA_B + 1, 0:2 * H_SENT]
    do_wT = slab_ref[_S_DO_W:_S_DO_W + 2 * H_SENT, 0:C]
    do_b = slab_ref[_S_DO_B:_S_DO_B + 1, 0:C]

    # ---- in-kernel embedding gather via one-hot matmul (word-major rows) -----
    doc = doc_ref[...]                                              # (TOK_ROWS, 1) int32
    iota = lax.broadcasted_iota(jnp.int32, (TOK_ROWS, VOCAB), 1)
    onehot = (iota == doc).astype(jnp.float32)                      # (TOK_ROWS, VOCAB)
    emb_all = jnp.dot(onehot, emb_tab,
                      preferred_element_type=jnp.float32)           # (TOK_ROWS, E)

    # ---- word GRU: input-to-hidden hoisted out of the serial loop ------------
    gi_all = jnp.dot(emb_all, wih_w,
                     preferred_element_type=jnp.float32) + bi_w     # (TOK_ROWS, GW)

    h = jnp.zeros((S_PAD, 2 * H_WORD), jnp.float32)                 # [h_fwd | h_bwd]
    wordenc_rows = []
    for j in range(W):                                              # unrolled, W=6
        gi = gi_all[j * S_PAD:(j + 1) * S_PAD, :]                   # 8-aligned static slice
        gh = jnp.dot(h, whh_w, preferred_element_type=jnp.float32) + bh_w
        r = jax.nn.sigmoid(gi[:, :2 * H_WORD] + gh[:, :2 * H_WORD])
        z = jax.nn.sigmoid(gi[:, 2 * H_WORD:4 * H_WORD] + gh[:, 2 * H_WORD:4 * H_WORD])
        n = jnp.tanh(gi[:, 4 * H_WORD:6 * H_WORD] + r * gh[:, 4 * H_WORD:6 * H_WORD])
        h = (1.0 - z) * n + z * h
        wordenc_rows.append(h)
    wordenc_all = jnp.concatenate(wordenc_rows, axis=0)             # (TOK_ROWS, 2*H_WORD)

    # ---- word attention: softmax over an (N,1) column is exactly 1.0 ---------
    u_word = jnp.tanh(
        jnp.dot(wordenc_all, wa_wT, preferred_element_type=jnp.float32) + wa_b)
    sent_summ = u_word[0:S_PAD, :]
    for j in range(1, W):
        sent_summ = sent_summ + u_word[j * S_PAD:(j + 1) * S_PAD, :]  # (S_PAD, H_SENT)

    # ---- sentence GRU (zero h0 -> the h @ W_hh term vanishes exactly) --------
    gi_s = jnp.dot(sent_summ, wih_s,
                   preferred_element_type=jnp.float32) + bi_s       # (S_PAD, GS)
    r_s = jax.nn.sigmoid(gi_s[:, :2 * H_SENT] + bh_s[:, :2 * H_SENT])
    z_s = jax.nn.sigmoid(gi_s[:, 2 * H_SENT:4 * H_SENT] + bh_s[:, 2 * H_SENT:4 * H_SENT])
    n_s = jnp.tanh(gi_s[:, 4 * H_SENT:6 * H_SENT] + r_s * bh_s[:, 4 * H_SENT:6 * H_SENT])
    sentenc = (1.0 - z_s) * n_s                                     # (S_PAD, 2*H_SENT)

    # ---- sentence attention (weights == 1) + classifier + log-softmax --------
    u_sent = jnp.tanh(
        jnp.dot(sentenc, sa_wT, preferred_element_type=jnp.float32) + sa_b)
    row = lax.broadcasted_iota(jnp.int32, (S_PAD, 2 * H_SENT), 0)
    doc_summ = jnp.sum(jnp.where(row < S, u_sent, 0.0),
                       axis=0, keepdims=True)                       # (1, 2*H_SENT)
    out = jnp.dot(doc_summ, do_wT, preferred_element_type=jnp.float32) + do_b  # (1, C)
    m = jnp.max(out, axis=1, keepdims=True)
    logp = out - (m + jnp.log(jnp.sum(jnp.exp(out - m), axis=1, keepdims=True)))

    # ---- output: zero-init lane-dense tile + one narrow sub-store ------------
    out_ref[...] = jnp.zeros((8, OUT_COLS), jnp.float32)
    out_ref[0:1, 0:C] = logp


# ---- weight packing (pre-transpose, gate-interleave, one 8-aligned slab) -----
def _gate_interleave(mf, mb, hdim):
    # (rows, 3*hdim) x2 -> (rows, 6*hdim) with column order [r_f r_b z_f z_b n_f n_b]
    return jnp.concatenate(
        [m[:, g * hdim:(g + 1) * hdim] for g in range(3) for m in (mf, mb)], axis=1)


def _pack_params(params):
    emb = params["embedding"]
    wif, whf, bif, bhf, wib, whb, bib, bhb = params["word_gru"]
    sif, _shf, sbif, sbhf, sib, _shb, sbib, sbhb = params["sent_gru"]
    wa_w, wa_b, _uw_w = params["word_attn"]      # u_w unused: softmax(dim=1) == 1 exactly
    sa_w, sa_b, _us_w = params["sent_attn"]      # u_s unused: softmax(dim=1) == 1 exactly
    do_w, do_b = params["dense_out"]

    # word GRU: both directions stacked, gate-interleaved; recurrent matrix block-diag
    wih_w = _gate_interleave(wif.T, wib.T, H_WORD)                  # (E, GW)
    bi_w = _gate_interleave(bif, bib, H_WORD)                       # (1, GW)
    bh_w = _gate_interleave(bhf, bhb, H_WORD)                       # (1, GW)
    whfT, whbT = whf.T, whb.T                                       # (H_WORD, 3*H_WORD)
    zero = jnp.zeros((H_WORD, H_WORD), jnp.float32)
    top = jnp.concatenate(
        [blk for g in range(3)
         for blk in (whfT[:, g * H_WORD:(g + 1) * H_WORD], zero)], axis=1)
    bot = jnp.concatenate(
        [blk for g in range(3)
         for blk in (zero, whbT[:, g * H_WORD:(g + 1) * H_WORD])], axis=1)
    whh_w = jnp.concatenate([top, bot], axis=0)                     # (2*H_WORD, GW)

    # sentence GRU: zero h0 -> only input-to-hidden weights + both bias vectors needed
    wih_s = _gate_interleave(sif.T, sib.T, H_SENT)                  # (H_SENT, GS)
    bi_s = _gate_interleave(sbif, sbib, H_SENT)
    bh_s = _gate_interleave(sbhf, sbhb, H_SENT)

    slab = jnp.zeros((SLAB_ROWS, GS), jnp.float32)
    slab = slab.at[_S_EMB:_S_EMB + VOCAB, :E].set(emb)
    slab = slab.at[_S_WIH_W:_S_WIH_W + E, :GW].set(wih_w)
    slab = slab.at[_S_WHH_W:_S_WHH_W + 2 * H_WORD, :GW].set(whh_w)
    slab = slab.at[_S_BI_W, :GW].set(bi_w[0])
    slab = slab.at[_S_BH_W, :GW].set(bh_w[0])
    slab = slab.at[_S_WIH_S:_S_WIH_S + H_SENT, :GS].set(wih_s)
    slab = slab.at[_S_BI_S, :GS].set(bi_s[0])
    slab = slab.at[_S_BH_S, :GS].set(bh_s[0])
    slab = slab.at[_S_WA_W:_S_WA_W + 2 * H_WORD, :2 * H_WORD].set(wa_w.T)
    slab = slab.at[_S_WA_B, :2 * H_WORD].set(wa_b[0])
    slab = slab.at[_S_SA_W:_S_SA_W + 2 * H_SENT, :2 * H_SENT].set(sa_w.T)
    slab = slab.at[_S_SA_B, :2 * H_SENT].set(sa_b[0])
    slab = slab.at[_S_DO_W:_S_DO_W + 2 * H_SENT, :C].set(do_w.T)
    slab = slab.at[_S_DO_B, :C].set(do_b[0])
    return slab


# ---- wrapper ------------------------------------------------------------------
@jax.jit
def han_forward(documents, params):
    """documents: (B, S, W) int32 token ids. Returns (word_w, sent_w, logp)."""
    B = documents.shape[0]
    slab = _pack_params(params)

    # word-major token layout, S padded to 8: row j*S_PAD + i = documents[b, i, j]
    doc_pad = jnp.pad(documents, ((0, 0), (0, S_PAD - S), (0, 0)))
    doc_wm = doc_pad.transpose(0, 2, 1).reshape(B, TOK_ROWS, 1).astype(jnp.int32)

    cost = pl.CostEstimate(
        flops=300_000 * B,
        transcendentals=4_200 * B,
        bytes_accessed=SLAB_ROWS * GS * 4 + B * (TOK_ROWS * 4 + 8 * OUT_COLS * 4),
    )

    packed = pl.pallas_call(
        _han_kernel,
        out_shape=jax.ShapeDtypeStruct((B, 8, OUT_COLS), jnp.float32),
        grid=(B,),
        in_specs=[
            # per-document token column (tiny; VMEM-resident by default)
            pl.BlockSpec((None, TOK_ROWS, 1), lambda b: (b, 0, 0)),
            # one weight slab, same block for every grid step -> stays resident in VMEM
            pl.BlockSpec((SLAB_ROWS, GS), lambda b: (0, 0)),
        ],
        out_specs=pl.BlockSpec((None, 8, OUT_COLS), lambda b: (b, 0, 0)),
        compiler_params=pltpu.CompilerParams(dimension_semantics=("parallel",)),
        cost_estimate=cost,
    )(doc_wm, slab)

    logp = packed[:, 0, :C]                                          # (B, C)
    # Softmax(dim=1) over an (N, 1) score column is identically 1.0 (exact),
    # faithful to the PyTorch module (dim=1 on a single-column score).
    word_w = jnp.ones((B, S, W, 1), jnp.float32)
    sent_w = jnp.ones((B, S, 1), jnp.float32)
    return word_w, sent_w, logp


# ---- pure-JAX reference (mirrors the PyTorch forward, one document) ------------
def han_reference(document, params):
    emb_tab = params["embedding"]
    wif, whf, bif, bhf, wib, whb, bib, bhb = params["word_gru"]
    wa_w, wa_b, uw_w = params["word_attn"]
    sif, shf, sbif, sbhf, sib, shb, sbib, sbhb = params["sent_gru"]
    sa_w, sa_b, us_w = params["sent_attn"]
    do_w, do_b = params["dense_out"]

    word_ws, sentenc_rows = [], []
    for i in range(S):
        h_f = jnp.zeros((1, H_WORD), jnp.float32)
        h_b = jnp.zeros((1, H_WORD), jnp.float32)
        rows = []
        for j in range(W):
            x = emb_tab[document[i, j]][None, :]
            h_f = _gru_cell(x, h_f, wif, whf, bif, bhf)
            h_b = _gru_cell(x, h_b, wib, whb, bib, bhb)
            rows.append(jnp.concatenate([h_f, h_b], axis=1))
        wordenc = jnp.concatenate(rows, axis=0)
        u_word = jnp.tanh(wordenc @ wa_w.T + wa_b)
        wwt = jax.nn.softmax(u_word @ uw_w.T, axis=1)
        word_ws.append(wwt)
        sent_summ = jnp.sum(u_word * wwt, axis=0, keepdims=True)
        zs = jnp.zeros((1, H_SENT), jnp.float32)
        hs_f = _gru_cell(sent_summ, zs, sif, shf, sbif, sbhf)
        hs_b = _gru_cell(sent_summ, zs, sib, shb, sbib, sbhb)
        sentenc_rows.append(jnp.concatenate([hs_f, hs_b], axis=1))
    sentenc = jnp.concatenate(sentenc_rows, axis=0)
    u_sent = jnp.tanh(sentenc @ sa_w.T + sa_b)
    swt = jax.nn.softmax(u_sent @ us_w.T, axis=1)
    doc_summ = jnp.sum(u_sent * swt, axis=0, keepdims=True)
    out = doc_summ @ do_w.T + do_b
    return jnp.stack(word_ws), swt, jax.nn.log_softmax(out, axis=1)[0]


# ---- deterministic parameter init ----------------------------------------------
def init_params(key):
    ks = jax.random.split(key, 26)
    u = lambda k, shape, s=0.2: jax.random.uniform(k, shape, jnp.float32, -s, s)
    params = {}
    params["embedding"] = u(ks[0], (VOCAB, E), 1.0)
    params["word_gru"] = (
        u(ks[1], (3 * H_WORD, E)), u(ks[2], (3 * H_WORD, H_WORD)),
        u(ks[3], (1, 3 * H_WORD)), u(ks[4], (1, 3 * H_WORD)),
        u(ks[5], (3 * H_WORD, E)), u(ks[6], (3 * H_WORD, H_WORD)),
        u(ks[7], (1, 3 * H_WORD)), u(ks[8], (1, 3 * H_WORD)),
    )
    params["word_attn"] = (
        u(ks[9], (2 * H_WORD, 2 * H_WORD)),
        u(ks[10], (1, 2 * H_WORD)),
        u(ks[11], (1, 2 * H_WORD)),       # u_w (no bias)
    )
    params["sent_gru"] = (
        u(ks[12], (3 * H_SENT, H_SENT)), u(ks[13], (3 * H_SENT, H_SENT)),
        u(ks[14], (1, 3 * H_SENT)), u(ks[15], (1, 3 * H_SENT)),
        u(ks[16], (3 * H_SENT, H_SENT)), u(ks[17], (3 * H_SENT, H_SENT)),
        u(ks[18], (1, 3 * H_SENT)), u(ks[19], (1, 3 * H_SENT)),
    )
    params["sent_attn"] = (
        u(ks[20], (2 * H_SENT, 2 * H_SENT)),
        u(ks[21], (1, 2 * H_SENT)),
        u(ks[22], (1, 2 * H_SENT)),       # u_s (no bias)
    )
    params["dense_out"] = (u(ks[23], (C, 2 * H_SENT)), u(ks[24], (1, C)))
    return params


if __name__ == "__main__":
    key = jax.random.PRNGKey(0)
    doc_key, param_key = jax.random.split(key)
    B = 8
    documents = jax.random.randint(doc_key, (B, S, W), 0, VOCAB, dtype=jnp.int32)
    params = init_params(param_key)

    word_w, sent_w, logp = han_forward(documents, params)
    jax.block_until_ready((word_w, sent_w, logp))

    for b in range(B):
        ww_r, sw_r, lp_r = han_reference(documents[b], params)
        assert jnp.allclose(word_w[b], ww_r, atol=1e-5), f"word attention mismatch (doc {b})"
        assert jnp.allclose(sent_w[b], sw_r, atol=1e-5), f"sentence attention mismatch (doc {b})"
        assert jnp.allclose(logp[b], lp_r, atol=1e-4), f"log-softmax output mismatch (doc {b})"

    print("KERNEL_OK")
</pallas_src>

<mosaic_0001>
module attributes {stable_mosaic.version = 11 : i64} {
  func.func @_han_kernel(%arg0: i32, %arg1: memref<1x48x1xi32, #tpu.memory_space<vmem>>, %arg2: memref<240x96xf32, #tpu.memory_space<vmem>>, %arg3: memref<1x8x128xf32, #tpu.memory_space<vmem>>) attributes {dimension_semantics = [#tpu.dimension_semantics<parallel>], iteration_bounds = array<i64: 8>, scalar_prefetch = 0 : i64, scratch_operands = 0 : i64, tpu.core_type = #tpu.core_type<tc>, window_params = [{transform_indices = @transform_0, window_bounds = array<i64: 1, 48, 1>}, {pipeline_mode = #tpu.pipeline_mode<synchronous>, transform_indices = @transform_1, window_bounds = array<i64: 240, 96>}, {transform_indices = @transform_2, window_bounds = array<i64: 1, 8, 128>}]} {
    %c0 = arith.constant 0 : index
    %c0_0 = arith.constant 0 : index
    %0 = vector.load %arg2[%c0, %c0_0] : memref<240x96xf32, #tpu.memory_space<vmem>>, vector<50x16xf32>
    %c56 = arith.constant 56 : index
    %c0_1 = arith.constant 0 : index
    %1 = vector.load %arg2[%c56, %c0_1] : memref<240x96xf32, #tpu.memory_space<vmem>>, vector<16x48xf32>
    %c72 = arith.constant 72 : index
    %c0_2 = arith.constant 0 : index
    %2 = vector.load %arg2[%c72, %c0_2] : memref<240x96xf32, #tpu.memory_space<vmem>>, vector<16x48xf32>
    %c88 = arith.constant 88 : index
    %c0_3 = arith.constant 0 : index
    %3 = vector.load %arg2[%c88, %c0_3] : memref<240x96xf32, #tpu.memory_space<vmem>>, vector<1x48xf32>
    %c96 = arith.constant 96 : index
    %c0_4 = arith.constant 0 : index
    %4 = vector.load %arg2[%c96, %c0_4] : memref<240x96xf32, #tpu.memory_space<vmem>>, vector<1x48xf32>
    %c104 = arith.constant 104 : index
    %c0_5 = arith.constant 0 : index
    %5 = vector.load %arg2[%c104, %c0_5] : memref<240x96xf32, #tpu.memory_space<vmem>>, vector<16x96xf32>
    %c120 = arith.constant 120 : index
    %c0_6 = arith.constant 0 : index
    %6 = vector.load %arg2[%c120, %c0_6] : memref<240x96xf32, #tpu.memory_space<vmem>>, vector<1x96xf32>
    %c128 = arith.constant 128 : index
    %c0_7 = arith.constant 0 : index
    %7 = vector.load %arg2[%c128, %c0_7] : memref<240x96xf32, #tpu.memory_space<vmem>>, vector<1x96xf32>
    %c136 = arith.constant 136 : index
    %c0_8 = arith.constant 0 : index
    %8 = vector.load %arg2[%c136, %c0_8] : memref<240x96xf32, #tpu.memory_space<vmem>>, vector<16x16xf32>
    %c152 = arith.constant 152 : index
    %c0_9 = arith.constant 0 : index
    %9 = vector.load %arg2[%c152, %c0_9] : memref<240x96xf32, #tpu.memory_space<vmem>>, vector<1x16xf32>
    %c160 = arith.constant 160 : index
    %c0_10 = arith.constant 0 : index
    %10 = vector.load %arg2[%c160, %c0_10] : memref<240x96xf32, #tpu.memory_space<vmem>>, vector<32x32xf32>
    %c192 = arith.constant 192 : index
    %c0_11 = arith.constant 0 : index
    %11 = vector.load %arg2[%c192, %c0_11] : memref<240x96xf32, #tpu.memory_space<vmem>>, vector<1x32xf32>
    %c200 = arith.constant 200 : index
    %c0_12 = arith.constant 0 : index
    %12 = vector.load %arg2[%c200, %c0_12] : memref<240x96xf32, #tpu.memory_space<vmem>>, vector<32x5xf32>
    %c232 = arith.constant 232 : index
    %c0_13 = arith.constant 0 : index
    %13 = vector.load %arg2[%c232, %c0_13] : memref<240x96xf32, #tpu.memory_space<vmem>>, vector<1x5xf32>
    %c0_14 = arith.constant 0 : index
    %c0_15 = arith.constant 0 : index
    %c0_16 = arith.constant 0 : index
    %14 = vector.load %arg1[%c0_14, %c0_15, %c0_16] : memref<1x48x1xi32, #tpu.memory_space<vmem>>, vector<1x48x1xi32>
    %15 = vector.shape_cast %14 : vector<1x48x1xi32> to vector<48x1xi32>
    %16 = tpu.iota {dimensions = array<i32: 1>} : vector<48x50xi32>
    %17 = vector.broadcast %15 : vector<48x1xi32> to vector<48x50xi32>
    %18 = arith.cmpi eq, %16, %17 : vector<48x50xi32>
    %19 = arith.extui %18 : vector<48x50xi1> to vector<48x50xi32>
    %20 = arith.sitofp %19 : vector<48x50xi32> to vector<48x50xf32>
    %cst = arith.constant dense<0.000000e+00> : vector<48x16xf32>
    %21 = tpu.matmul %20, %0, %cst {dimension_numbers = #tpu.dot_dimension_numbers<[1], [0], [0], [1], [0, 0, 1, 1], [], []>} : vector<48x50xf32>, vector<50x16xf32>, vector<48x16xf32> -> vector<48x16xf32>
    %cst_17 = arith.constant dense<0.000000e+00> : vector<48x48xf32>
    %22 = tpu.matmul %21, %1, %cst_17 {dimension_numbers = #tpu.dot_dimension_numbers<[1], [0], [0], [1], [0, 0, 1, 1], [], []>} : vector<48x16xf32>, vector<16x48xf32>, vector<48x48xf32> -> vector<48x48xf32>
    %23 = vector.broadcast %3 : vector<1x48xf32> to vector<48x48xf32>
    %24 = arith.addf %22, %23 : vector<48x48xf32>
    %cst_18 = arith.constant 0.000000e+00 : f32
    %25 = vector.broadcast %cst_18 : f32 to vector<8x16xf32>
    %26 = vector.extract_strided_slice %24 {offsets = [0, 0], sizes = [8, 48], strides = [1, 1]} : vector<48x48xf32> to vector<8x48xf32>
    %cst_19 = arith.constant dense<0.000000e+00> : vector<8x48xf32>
    %27 = tpu.matmul %25, %2, %cst_19 {dimension_numbers = #tpu.dot_dimension_numbers<[1], [0], [0], [1], [0, 0, 1, 1], [], []>} : vector<8x16xf32>, vector<16x48xf32>, vector<8x48xf32> -> vector<8x48xf32>
    %28 = vector.broadcast %4 : vector<1x48xf32> to vector<8x48xf32>
    %29 = arith.addf %27, %28 : vector<8x48xf32>
    %30 = vector.extract_strided_slice %26 {offsets = [0, 0], sizes = [8, 16], strides = [1, 1]} : vector<8x48xf32> to vector<8x16xf32>
    %31 = vector.extract_strided_slice %29 {offsets = [0, 0], sizes = [8, 16], strides = [1, 1]} : vector<8x48xf32> to vector<8x16xf32>
    %32 = arith.addf %30, %31 : vector<8x16xf32>
    %33 = arith.negf %32 : vector<8x16xf32>
    %34 = math.exp %33 : vector<8x16xf32>
    %cst_20 = arith.constant 1.000000e+00 : f32
    %35 = vector.broadcast %cst_20 : f32 to vector<8x16xf32>
    %36 = arith.addf %35, %34 : vector<8x16xf32>
    %37 = arith.divf %35, %36 : vector<8x16xf32>
    %38 = vector.extract_strided_slice %26 {offsets = [0, 16], sizes = [8, 16], strides = [1, 1]} : vector<8x48xf32> to vector<8x16xf32>
    %39 = vector.extract_strided_slice %29 {offsets = [0, 16], sizes = [8, 16], strides = [1, 1]} : vector<8x48xf32> to vector<8x16xf32>
    %40 = arith.addf %38, %39 : vector<8x16xf32>
    %41 = arith.negf %40 : vector<8x16xf32>
    %42 = math.exp %41 : vector<8x16xf32>
    %cst_21 = arith.constant 1.000000e+00 : f32
    %43 = vector.broadcast %cst_21 : f32 to vector<8x16xf32>
    %44 = arith.addf %43, %42 : vector<8x16xf32>
    %45 = arith.divf %43, %44 : vector<8x16xf32>
    %46 = vector.extract_strided_slice %26 {offsets = [0, 32], sizes = [8, 16], strides = [1, 1]} : vector<8x48xf32> to vector<8x16xf32>
    %47 = vector.extract_strided_slice %29 {offsets = [0, 32], sizes = [8, 16], strides = [1, 1]} : vector<8x48xf32> to vector<8x16xf32>
    %48 = arith.mulf %37, %47 : vector<8x16xf32>
    %49 = arith.addf %46, %48 : vector<8x16xf32>
    %50 = math.tanh %49 : vector<8x16xf32>
    %cst_22 = arith.constant 1.000000e+00 : f32
    %51 = vector.broadcast %cst_22 : f32 to vector<8x16xf32>
    %52 = arith.subf %51, %45 : vector<8x16xf32>
    %53 = arith.mulf %52, %50 : vector<8x16xf32>
    %54 = arith.mulf %45, %25 : vector<8x16xf32>
    %55 = arith.addf %53, %54 : vector<8x16xf32>
    %56 = vector.extract_strided_slice %24 {offsets = [8, 0], sizes = [8, 48], strides = [1, 1]} : vector<48x48xf32> to vector<8x48xf32>
    %cst_23 = arith.constant dense<0.000000e+00> : vector<8x48xf32>
    %57 = tpu.matmul %55, %2, %cst_23 {dimension_numbers = #tpu.dot_dimension_numbers<[1], [0], [0], [1], [0, 0, 1, 1], [], []>} : vector<8x16xf32>, vector<16x48xf32>, vector<8x48xf32> -> vector<8x48xf32>
    %58 = vector.broadcast %4 : vector<1x48xf32> to vector<8x48xf32>
    %59 = arith.addf %57, %58 : vector<8x48xf32>
    %60 = vector.extract_strided_slice %56 {offsets = [0, 0], sizes = [8, 16], strides = [1, 1]} : vector<8x48xf32> to vector<8x16xf32>
    %61 = vector.extract_strided_slice %59 {offsets = [0, 0], sizes = [8, 16], strides = [1, 1]} : vector<8x48xf32> to vector<8x16xf32>
    %62 = arith.addf %60, %61 : vector<8x16xf32>
    %63 = arith.negf %62 : vector<8x16xf32>
    %64 = math.exp %63 : vector<8x16xf32>
    %cst_24 = arith.constant 1.000000e+00 : f32
    %65 = vector.broadcast %cst_24 : f32 to vector<8x16xf32>
    %66 = arith.addf %65, %64 : vector<8x16xf32>
    %67 = arith.divf %65, %66 : vector<8x16xf32>
    %68 = vector.extract_strided_slice %56 {offsets = [0, 16], sizes = [8, 16], strides = [1, 1]} : vector<8x48xf32> to vector<8x16xf32>
    %69 = vector.extract_strided_slice %59 {offsets = [0, 16], sizes = [8, 16], strides = [1, 1]} : vector<8x48xf32> to vector<8x16xf32>
    %70 = arith.addf %68, %69 : vector<8x16xf32>
    %71 = arith.negf %70 : vector<8x16xf32>
    %72 = math.exp %71 : vector<8x16xf32>
    %cst_25 = arith.constant 1.000000e+00 : f32
    %73 = vector.broadcast %cst_25 : f32 to vector<8x16xf32>
    %74 = arith.addf %73, %72 : vector<8x16xf32>
    %75 = arith.divf %73, %74 : vector<8x16xf32>
    %76 = vector.extract_strided_slice %56 {offsets = [0, 32], sizes = [8, 16], strides = [1, 1]} : vector<8x48xf32> to vector<8x16xf32>
    %77 = vector.extract_strided_slice %59 {offsets = [0, 32], sizes = [8, 16], strides = [1, 1]} : vector<8x48xf32> to vector<8x16xf32>
    %78 = arith.mulf %67, %77 : vector<8x16xf32>
    %79 = arith.addf %76, %78 : vector<8x16xf32>
    %80 = math.tanh %79 : vector<8x16xf32>
    %cst_26 = arith.constant 1.000000e+00 : f32
    %81 = vector.broadcast %cst_26 : f32 to vector<8x16xf32>
    %82 = arith.subf %81, %75 : vector<8x16xf32>
    %83 = arith.mulf %82, %80 : vector<8x16xf32>
    %84 = arith.mulf %75, %55 : vector<8x16xf32>
    %85 = arith.addf %83, %84 : vector<8x16xf32>
    %86 = vector.extract_strided_slice %24 {offsets = [16, 0], sizes = [8, 48], strides = [1, 1]} : vector<48x48xf32> to vector<8x48xf32>
    %cst_27 = arith.constant dense<0.000000e+00> : vector<8x48xf32>
    %87 = tpu.matmul %85, %2, %cst_27 {dimension_numbers = #tpu.dot_dimension_numbers<[1], [0], [0], [1], [0, 0, 1, 1], [], []>} : vector<8x16xf32>, vector<16x48xf32>, vector<8x48xf32> -> vector<8x48xf32>
    %88 = vector.broadcast %4 : vector<1x48xf32> to vector<8x48xf32>
    %89 = arith.addf %87, %88 : vector<8x48xf32>
    %90 = vector.extract_strided_slice %86 {offsets = [0, 0], sizes = [8, 16], strides = [1, 1]} : vector<8x48xf32> to vector<8x16xf32>
    %91 = vector.extract_strided_slice %89 {offsets = [0, 0], sizes = [8, 16], strides = [1, 1]} : vector<8x48xf32> to vector<8x16xf32>
    %92 = arith.addf %90, %91 : vector<8x16xf32>
    %93 = arith.negf %92 : vector<8x16xf32>
    %94 = math.exp %93 : vector<8x16xf32>
    %cst_28 = arith.constant 1.000000e+00 : f32
    %95 = vector.broadcast %cst_28 : f32 to vector<8x16xf32>
    %96 = arith.addf %95, %94 : vector<8x16xf32>
    %97 = arith.divf %95, %96 : vector<8x16xf32>
    %98 = vector.extract_strided_slice %86 {offsets = [0, 16], sizes = [8, 16], strides = [1, 1]} : vector<8x48xf32> to vector<8x16xf32>
    %99 = vector.extract_strided_slice %89 {offsets = [0, 16], sizes = [8, 16], strides = [1, 1]} : vector<8x48xf32> to vector<8x16xf32>
    %100 = arith.addf %98, %99 : vector<8x16xf32>
    %101 = arith.negf %100 : vector<8x16xf32>
    %102 = math.exp %101 : vector<8x16xf32>
    %cst_29 = arith.constant 1.000000e+00 : f32
    %103 = vector.broadcast %cst_29 : f32 to vector<8x16xf32>
    %104 = arith.addf %103, %102 : vector<8x16xf32>
    %105 = arith.divf %103, %104 : vector<8x16xf32>
    %106 = vector.extract_strided_slice %86 {offsets = [0, 32], sizes = [8, 16], strides = [1, 1]} : vector<8x48xf32> to vector<8x16xf32>
    %107 = vector.extract_strided_slice %89 {offsets = [0, 32], sizes = [8, 16], strides = [1, 1]} : vector<8x48xf32> to vector<8x16xf32>
    %108 = arith.mulf %97, %107 : vector<8x16xf32>
    %109 = arith.addf %106, %108 : vector<8x16xf32>
    %110 = math.tanh %109 : vector<8x16xf32>
    %cst_30 = arith.constant 1.000000e+00 : f32
    %111 = vector.broadcast %cst_30 : f32 to vector<8x16xf32>
    %112 = arith.subf %111, %105 : vector<8x16xf32>
    %113 = arith.mulf %112, %110 : vector<8x16xf32>
    %114 = arith.mulf %105, %85 : vector<8x16xf32>
    %115 = arith.addf %113, %114 : vector<8x16xf32>
    %116 = vector.extract_strided_slice %24 {offsets = [24, 0], sizes = [8, 48], strides = [1, 1]} : vector<48x48xf32> to vector<8x48xf32>
    %cst_31 = arith.constant dense<0.000000e+00> : vector<8x48xf32>
    %117 = tpu.matmul %115, %2, %cst_31 {dimension_numbers = #tpu.dot_dimension_numbers<[1], [0], [0], [1], [0, 0, 1, 1], [], []>} : vector<8x16xf32>, vector<16x48xf32>, vector<8x48xf32> -> vector<8x48xf32>
    %118 = vector.broadcast %4 : vector<1x48xf32> to vector<8x48xf32>
    %119 = arith.addf %117, %118 : vector<8x48xf32>
    %120 = vector.extract_strided_slice %116 {offsets = [0, 0], sizes = [8, 16], strides = [1, 1]} : vector<8x48xf32> to vector<8x16xf32>
    %121 = vector.extract_strided_slice %119 {offsets = [0, 0], sizes = [8, 16], strides = [1, 1]} : vector<8x48xf32> to vector<8x16xf32>
    %122 = arith.addf %120, %121 : vector<8x16xf32>
    %123 = arith.negf %122 : vector<8x16xf32>
    %124 = math.exp %123 : vector<8x16xf32>
    %cst_32 = arith.constant 1.000000e+00 : f32
    %125 = vector.broadcast %cst_32 : f32 to vector<8x16xf32>
    %126 = arith.addf %125, %124 : vector<8x16xf32>
    %127 = arith.divf %125, %126 : vector<8x16xf32>
    %128 = vector.extract_strided_slice %116 {offsets = [0, 16], sizes = [8, 16], strides = [1, 1]} : vector<8x48xf32> to vector<8x16xf32>
    %129 = vector.extract_strided_slice %119 {offsets = [0, 16], sizes = [8, 16], strides = [1, 1]} : vector<8x48xf32> to vector<8x16xf32>
    %130 = arith.addf %128, %129 : vector<8x16xf32>
    %131 = arith.negf %130 : vector<8x16xf32>
    %132 = math.exp %131 : vector<8x16xf32>
    %cst_33 = arith.constant 1.000000e+00 : f32
    %133 = vector.broadcast %cst_33 : f32 to vector<8x16xf32>
    %134 = arith.addf %133, %132 : vector<8x16xf32>
    %135 = arith.divf %133, %134 : vector<8x16xf32>
    %136 = vector.extract_strided_slice %116 {offsets = [0, 32], sizes = [8, 16], strides = [1, 1]} : vector<8x48xf32> to vector<8x16xf32>
    %137 = vector.extract_strided_slice %119 {offsets = [0, 32], sizes = [8, 16], strides = [1, 1]} : vector<8x48xf32> to vector<8x16xf32>
    %138 = arith.mulf %127, %137 : vector<8x16xf32>
    %139 = arith.addf %136, %138 : vector<8x16xf32>
    %140 = math.tanh %139 : vector<8x16xf32>
    %cst_34 = arith.constant 1.000000e+00 : f32
    %141 = vector.broadcast %cst_34 : f32 to vector<8x16xf32>
    %142 = arith.subf %141, %135 : vector<8x16xf32>
    %143 = arith.mulf %142, %140 : vector<8x16xf32>
    %144 = arith.mulf %135, %115 : vector<8x16xf32>
    %145 = arith.addf %143, %144 : vector<8x16xf32>
    %146 = vector.extract_strided_slice %24 {offsets = [32, 0], sizes = [8, 48], strides = [1, 1]} : vector<48x48xf32> to vector<8x48xf32>
    %cst_35 = arith.constant dense<0.000000e+00> : vector<8x48xf32>
    %147 = tpu.matmul %145, %2, %cst_35 {dimension_numbers = #tpu.dot_dimension_numbers<[1], [0], [0], [1], [0, 0, 1, 1], [], []>} : vector<8x16xf32>, vector<16x48xf32>, vector<8x48xf32> -> vector<8x48xf32>
    %148 = vector.broadcast %4 : vector<1x48xf32> to vector<8x48xf32>
    %149 = arith.addf %147, %148 : vector<8x48xf32>
    %150 = vector.extract_strided_slice %146 {offsets = [0, 0], sizes = [8, 16], strides = [1, 1]} : vector<8x48xf32> to vector<8x16xf32>
    %151 = vector.extract_strided_slice %149 {offsets = [0, 0], sizes = [8, 16], strides = [1, 1]} : vector<8x48xf32> to vector<8x16xf32>
    %152 = arith.addf %150, %151 : vector<8x16xf32>
    %153 = arith.negf %152 : vector<8x16xf32>
    %154 = math.exp %153 : vector<8x16xf32>
    %cst_36 = arith.constant 1.000000e+00 : f32
    %155 = vector.broadcast %cst_36 : f32 to vector<8x16xf32>
    %156 = arith.addf %155, %154 : vector<8x16xf32>
    %157 = arith.divf %155, %156 : vector<8x16xf32>
    %158 = vector.extract_strided_slice %146 {offsets = [0, 16], sizes = [8, 16], strides = [1, 1]} : vector<8x48xf32> to vector<8x16xf32>
    %159 = vector.extract_strided_slice %149 {offsets = [0, 16], sizes = [8, 16], strides = [1, 1]} : vector<8x48xf32> to vector<8x16xf32>
    %160 = arith.addf %158, %159 : vector<8x16xf32>
    %161 = arith.negf %160 : vector<8x16xf32>
    %162 = math.exp %161 : vector<8x16xf32>
    %cst_37 = arith.constant 1.000000e+00 : f32
    %163 = vector.broadcast %cst_37 : f32 to vector<8x16xf32>
    %164 = arith.addf %163, %162 : vector<8x16xf32>
    %165 = arith.divf %163, %164 : vector<8x16xf32>
    %166 = vector.extract_strided_slice %146 {offsets = [0, 32], sizes = [8, 16], strides = [1, 1]} : vector<8x48xf32> to vector<8x16xf32>
    %167 = vector.extract_strided_slice %149 {offsets = [0, 32], sizes = [8, 16], strides = [1, 1]} : vector<8x48xf32> to vector<8x16xf32>
    %168 = arith.mulf %157, %167 : vector<8x16xf32>
    %169 = arith.addf %166, %168 : vector<8x16xf32>
    %170 = math.tanh %169 : vector<8x16xf32>
    %cst_38 = arith.constant 1.000000e+00 : f32
    %171 = vector.broadcast %cst_38 : f32 to vector<8x16xf32>
    %172 = arith.subf %171, %165 : vector<8x16xf32>
    %173 = arith.mulf %172, %170 : vector<8x16xf32>
    %174 = arith.mulf %165, %145 : vector<8x16xf32>
    %175 = arith.addf %173, %174 : vector<8x16xf32>
    %176 = vector.extract_strided_slice %24 {offsets = [40, 0], sizes = [8, 48], strides = [1, 1]} : vector<48x48xf32> to vector<8x48xf32>
    %cst_39 = arith.constant dense<0.000000e+00> : vector<8x48xf32>
    %177 = tpu.matmul %175, %2, %cst_39 {dimension_numbers = #tpu.dot_dimension_numbers<[1], [0], [0], [1], [0, 0, 1, 1], [], []>} : vector<8x16xf32>, vector<16x48xf32>, vector<8x48xf32> -> vector<8x48xf32>
    %178 = vector.broadcast %4 : vector<1x48xf32> to vector<8x48xf32>
    %179 = arith.addf %177, %178 : vector<8x48xf32>
    %180 = vector.extract_strided_slice %176 {offsets = [0, 0], sizes = [8, 16], strides = [1, 1]} : vector<8x48xf32> to vector<8x16xf32>
    %181 = vector.extract_strided_slice %179 {offsets = [0, 0], sizes = [8, 16], strides = [1, 1]} : vector<8x48xf32> to vector<8x16xf32>
    %182 = arith.addf %180, %181 : vector<8x16xf32>
    %183 = arith.negf %182 : vector<8x16xf32>
    %184 = math.exp %183 : vector<8x16xf32>
    %cst_40 = arith.constant 1.000000e+00 : f32
    %185 = vector.broadcast %cst_40 : f32 to vector<8x16xf32>
    %186 = arith.addf %185, %184 : vector<8x16xf32>
    %187 = arith.divf %185, %186 : vector<8x16xf32>
    %188 = vector.extract_strided_slice %176 {offsets = [0, 16], sizes = [8, 16], strides = [1, 1]} : vector<8x48xf32> to vector<8x16xf32>
    %189 = vector.extract_strided_slice %179 {offsets = [0, 16], sizes = [8, 16], strides = [1, 1]} : vector<8x48xf32> to vector<8x16xf32>
    %190 = arith.addf %188, %189 : vector<8x16xf32>
    %191 = arith.negf %190 : vector<8x16xf32>
    %192 = math.exp %191 : vector<8x16xf32>
    %cst_41 = arith.constant 1.000000e+00 : f32
    %193 = vector.broadcast %cst_41 : f32 to vector<8x16xf32>
    %194 = arith.addf %193, %192 : vector<8x16xf32>
    %195 = arith.divf %193, %194 : vector<8x16xf32>
    %196 = vector.extract_strided_slice %176 {offsets = [0, 32], sizes = [8, 16], strides = [1, 1]} : vector<8x48xf32> to vector<8x16xf32>
    %197 = vector.extract_strided_slice %179 {offsets = [0, 32], sizes = [8, 16], strides = [1, 1]} : vector<8x48xf32> to vector<8x16xf32>
    %198 = arith.mulf %187, %197 : vector<8x16xf32>
    %199 = arith.addf %196, %198 : vector<8x16xf32>
    %200 = math.tanh %199 : vector<8x16xf32>
    %cst_42 = arith.constant 1.000000e+00 : f32
    %201 = vector.broadcast %cst_42 : f32 to vector<8x16xf32>
    %202 = arith.subf %201, %195 : vector<8x16xf32>
    %203 = arith.mulf %202, %200 : vector<8x16xf32>
    %204 = arith.mulf %195, %175 : vector<8x16xf32>
    %205 = arith.addf %203, %204 : vector<8x16xf32>
    %206 = tpu.concatenate %55, %85, %115, %145, %175, %205 in 0 : vector<8x16xf32>, vector<8x16xf32>, vector<8x16xf32>, vector<8x16xf32>, vector<8x16xf32>, vector<8x16xf32> -> vector<48x16xf32>
    %cst_43 = arith.constant dense<0.000000e+00> : vector<48x16xf32>
    %207 = tpu.matmul %206, %8, %cst_43 {dimension_numbers = #tpu.dot_dimension_numbers<[1], [0], [0], [1], [0, 0, 1, 1], [], []>} : vector<48x16xf32>, vector<16x16xf32>, vector<48x16xf32> -> vector<48x16xf32>
    %208 = vector.broadcast %9 : vector<1x16xf32> to vector<48x16xf32>
    %209 = arith.addf %207, %208 : vector<48x16xf32>
    %210 = math.tanh %209 : vector<48x16xf32>
    %211 = vector.extract_strided_slice %210 {offsets = [0, 0], sizes = [8, 16], strides = [1, 1]} : vector<48x16xf32> to vector<8x16xf32>
    %212 = vector.extract_strided_slice %210 {offsets = [8, 0], sizes = [8, 16], strides = [1, 1]} : vector<48x16xf32> to vector<8x16xf32>
    %213 = arith.addf %211, %212 : vector<8x16xf32>
    %214 = vector.extract_strided_slice %210 {offsets = [16, 0], sizes = [8, 16], strides = [1, 1]} : vector<48x16xf32> to vector<8x16xf32>
    %215 = arith.addf %213, %214 : vector<8x16xf32>
    %216 = vector.extract_strided_slice %210 {offsets = [24, 0], sizes = [8, 16], strides = [1, 1]} : vector<48x16xf32> to vector<8x16xf32>
    %217 = arith.addf %215, %216 : vector<8x16xf32>
    %218 = vector.extract_strided_slice %210 {offsets = [32, 0], sizes = [8, 16], strides = [1, 1]} : vector<48x16xf32> to vector<8x16xf32>
    %219 = arith.addf %217, %218 : vector<8x16xf32>
    %220 = vector.extract_strided_slice %210 {offsets = [40, 0], sizes = [8, 16], strides = [1, 1]} : vector<48x16xf32> to vector<8x16xf32>
    %221 = arith.addf %219, %220 : vector<8x16xf32>
    %cst_44 = arith.constant dense<0.000000e+00> : vector<8x96xf32>
    %222 = tpu.matmul %221, %5, %cst_44 {dimension_numbers = #tpu.dot_dimension_numbers<[1], [0], [0], [1], [0, 0, 1, 1], [], []>} : vector<8x16xf32>, vector<16x96xf32>, vector<8x96xf32> -> vector<8x96xf32>
    %223 = vector.broadcast %6 : vector<1x96xf32> to vector<8x96xf32>
    %224 = arith.addf %222, %223 : vector<8x96xf32>
    %225 = vector.extract_strided_slice %224 {offsets = [0, 0], sizes = [8, 32], strides = [1, 1]} : vector<8x96xf32> to vector<8x32xf32>
    %226 = vector.extract_strided_slice %7 {offsets = [0, 0], sizes = [1, 32], strides = [1, 1]} : vector<1x96xf32> to vector<1x32xf32>
    %227 = vector.broadcast %226 : vector<1x32xf32> to vector<8x32xf32>
    %228 = arith.addf %225, %227 : vector<8x32xf32>
    %229 = arith.negf %228 : vector<8x32xf32>
    %230 = math.exp %229 : vector<8x32xf32>
    %cst_45 = arith.constant 1.000000e+00 : f32
    %231 = vector.broadcast %cst_45 : f32 to vector<8x32xf32>
    %232 = arith.addf %231, %230 : vector<8x32xf32>
    %233 = arith.divf %231, %232 : vector<8x32xf32>
    %234 = vector.extract_strided_slice %224 {offsets = [0, 32], sizes = [8, 32], strides = [1, 1]} : vector<8x96xf32> to vector<8x32xf32>
    %235 = vector.extract_strided_slice %7 {offsets = [0, 32], sizes = [1, 32], strides = [1, 1]} : vector<1x96xf32> to vector<1x32xf32>
    %236 = vector.broadcast %235 : vector<1x32xf32> to vector<8x32xf32>
    %237 = arith.addf %234, %236 : vector<8x32xf32>
    %238 = arith.negf %237 : vector<8x32xf32>
    %239 = math.exp %238 : vector<8x32xf32>
    %cst_46 = arith.constant 1.000000e+00 : f32
    %240 = vector.broadcast %cst_46 : f32 to vector<8x32xf32>
    %241 = arith.addf %240, %239 : vector<8x32xf32>
    %242 = arith.divf %240, %241 : vector<8x32xf32>
    %243 = vector.extract_strided_slice %224 {offsets = [0, 64], sizes = [8, 32], strides = [1, 1]} : vector<8x96xf32> to vector<8x32xf32>
    %244 = vector.extract_strided_slice %7 {offsets = [0, 64], sizes = [1, 32], strides = [1, 1]} : vector<1x96xf32> to vector<1x32xf32>
    %245 = vector.broadcast %244 : vector<1x32xf32> to vector<8x32xf32>
    %246 = arith.mulf %233, %245 : vector<8x32xf32>
    %247 = arith.addf %243, %246 : vector<8x32xf32>
    %248 = math.tanh %247 : vector<8x32xf32>
    %cst_47 = arith.constant 1.000000e+00 : f32
    %249 = vector.broadcast %cst_47 : f32 to vector<8x32xf32>
    %250 = arith.subf %249, %242 : vector<8x32xf32>
    %251 = arith.mulf %250, %248 : vector<8x32xf32>
    %cst_48 = arith.constant dense<0.000000e+00> : vector<8x32xf32>
    %252 = tpu.matmul %251, %10, %cst_48 {dimension_numbers = #tpu.dot_dimension_numbers<[1], [0], [0], [1], [0, 0, 1, 1], [], []>} : vector<8x32xf32>, vector<32x32xf32>, vector<8x32xf32> -> vector<8x32xf32>
    %253 = vector.broadcast %11 : vector<1x32xf32> to vector<8x32xf32>
    %254 = arith.addf %252, %253 : vector<8x32xf32>
    %255 = math.tanh %254 : vector<8x32xf32>
    %256 = tpu.iota {dimensions = array<i32: 0>} : vector<8x32xi32>
    %c4_i32 = arith.constant 4 : i32
    %257 = vector.broadcast %c4_i32 : i32 to vector<8x32xi32>
    %258 = arith.cmpi slt, %256, %257 : vector<8x32xi32>
    %cst_49 = arith.constant 0.000000e+00 : f32
    %259 = vector.broadcast %cst_49 : f32 to vector<8x32xf32>
    %260 = arith.select %258, %255, %259 : vector<8x32xi1>, vector<8x32xf32>
    %cst_50 = arith.constant dense<0.000000e+00> : vector<32xf32>
    %261 = vector.multi_reduction <add>, %260, %cst_50 [0] : vector<8x32xf32> to vector<32xf32>
    %262 = vector.shape_cast %261 : vector<32xf32> to vector<1x32xf32>
    %cst_51 = arith.constant dense<0.000000e+00> : vector<1x5xf32>
    %263 = tpu.matmul %262, %12, %cst_51 {dimension_numbers = #tpu.dot_dimension_numbers<[1], [0], [0], [1], [0, 0, 1, 1], [], []>} : vector<1x32xf32>, vector<32x5xf32>, vector<1x5xf32> -> vector<1x5xf32>
    %264 = arith.addf %263, %13 : vector<1x5xf32>
    %cst_52 = arith.constant dense<0xFF800000> : vector<1xf32>
    %265 = vector.multi_reduction <maximumf>, %264, %cst_52 [1] : vector<1x5xf32> to vector<1xf32>
    %266 = vector.shape_cast %265 : vector<1xf32> to vector<1x1xf32>
    %267 = vector.broadcast %266 : vector<1x1xf32> to vector<1x5xf32>
    %268 = arith.subf %264, %267 : vector<1x5xf32>
    %269 = math.exp %268 : vector<1x5xf32>
    %cst_53 = arith.constant dense<0.000000e+00> : vector<1xf32>
    %270 = vector.multi_reduction <add>, %269, %cst_53 [1] : vector<1x5xf32> to vector<1xf32>
    %271 = vector.shape_cast %270 : vector<1xf32> to vector<1x1xf32>
    %272 = math.log %271 : vector<1x1xf32>
    %273 = arith.addf %266, %272 : vector<1x1xf32>
    %274 = vector.broadcast %273 : vector<1x1xf32> to vector<1x5xf32>
    %275 = arith.subf %264, %274 : vector<1x5xf32>
    %cst_54 = arith.constant 0.000000e+00 : f32
    %276 = vector.broadcast %cst_54 : f32 to vector<8x128xf32>
    %c0_55 = arith.constant 0 : index
    %c0_56 = arith.constant 0 : index
    %c0_57 = arith.constant 0 : index
    %277 = vector.load %arg3[%c0_55, %c0_56, %c0_57] : memref<1x8x128xf32, #tpu.memory_space<vmem>>, vector<1x8x128xf32>
    %278 = vector.shape_cast %277 : vector<1x8x128xf32> to vector<8x128xf32>
    %279 = vector.shape_cast %276 : vector<8x128xf32> to vector<1x8x128xf32>
    tpu.vector_store %arg3[%c0_55, %c0_56, %c0_57], %279 {strides = array<i32>} : memref<1x8x128xf32, #tpu.memory_space<vmem>>, vector<1x8x128xf32>,
    %c0_58 = arith.constant 0 : index
    %c0_59 = arith.constant 0 : index
    %c0_60 = arith.constant 0 : index
    %280 = vector.load %arg3[%c0_58, %c0_59, %c0_60] : memref<1x8x128xf32, #tpu.memory_space<vmem>>, vector<1x1x5xf32>
    %281 = vector.shape_cast %280 : vector<1x1x5xf32> to vector<1x5xf32>
    %282 = vector.shape_cast %275 : vector<1x5xf32> to vector<1x1x5xf32>
    tpu.vector_store %arg3[%c0_58, %c0_59, %c0_60], %282 {strides = array<i32>} : memref<1x8x128xf32, #tpu.memory_space<vmem>>, vector<1x1x5xf32>,
    return
  }
  func.func @transform_0(%arg0: i32) -> (i32, i32, i32) {
    %c0_i32 = arith.constant 0 : i32
    %c0_i32_0 = arith.constant 0 : i32
    %c0_i32_1 = arith.constant 0 : i32
    return %arg0, %c0_i32, %c0_i32_0 : i32, i32, i32
  }
  func.func @transform_1(%arg0: i32) -> (i32, i32) {
    %c0_i32 = arith.constant 0 : i32
    %c0_i32_0 = arith.constant 0 : i32
    %c0_i32_1 = arith.constant 0 : i32
    return %c0_i32, %c0_i32_0 : i32, i32
  }
  func.func @transform_2(%arg0: i32) -> (i32, i32, i32) {
    %c0_i32 = arith.constant 0 : i32
    %c0_i32_0 = arith.constant 0 : i32
    %c0_i32_1 = arith.constant 0 : i32
    return %arg0, %c0_i32, %c0_i32_0 : i32, i32, i32
  }
}

</mosaic_0001>

<bundles_post_ra>
// kernel: han_forward.1
= control target key start
LH: loop header
LB: loop body
LE: loop exit
PB: predicated region body
PF: predicated region fallthrough
CT: control target
= control target key end

     0   :  { %s1912_s9 = smov 0   ;;  %s2169_s0 = inlined_call_operand.vmem [shape: s32[8,48,1], index: 0, kind: input, shape index: {}]   ;;  %s2170_s1 = inlined_call_operand.vmem [shape: f32[240,96], index: 1, kind: input, shape index: {}]   ;;  %s2171_s2 = inlined_call_operand.vmem [shape: f32[8,8,128], index: 2, kind: output, shape index: {}]  }
   0x1 LB: > { %s1514_s10 = sadd.s32 4294967295, %s1887_s9   ;;  %p1518_p0 = scmp.ge.s32.totalorder %s1887_s9, 1  ;;  %s1887_s9 = sphi %s1912_s9, %s12_s9  }
   0x2   : > { %p112_p1 = scmp.lt.s32.totalorder %s1887_s9, 9 }
   0x4   : > { %p113_p2 = pnand %p1518_p0, %p112_p1 }
   0x5   : > { %p133_p3 = scmp.lt.s32.totalorder (!%p113_p2), %s1514_s10, 7  ;;  %v142_v0 = vld [vmem:[%s2170_s1] sm:$0xff] (!%p113_p2)  ;;  %v143_v1 = vld [vmem:[%s2170_s1 + $0x8] sm:$0xff] (!%p113_p2)  ;;  %v144_v2 = vld [vmem:[%s2170_s1 + $0x10] sm:$0xff] (!%p113_p2)  ;;  %v1889_v3 = vmov (!%p113_p2), 0   ;;  %v1890_v9 = vmov (!%p113_p2), 0.0   ;;  %v178_v21 = vlaneseq (!%p113_p2) }
   0x6   : > { %116 = sbr.rel (%p113_p2) target bundleno = 6142 (0x17fe), region = 28  ;;  %1820 = vset.pattern.permute.xlu1 (!%p113_p2), %v1889_v3  ;;  %1819 = vset.pattern.permute.xlu0 (!%p113_p2), %v1889_v3  ;;  %v1749_v4 = vpack.c.bf16 (!%p113_p2), %v143_v1, %v142_v0  ;;  %v145_v5 = vld [vmem:[%s2170_s1 + $0x18] sm:$0xff] (!%p113_p2)  ;;  %v146_v7 = vld [vmem:[%s2170_s1 + $0x20] sm:$0xff] (!%p113_p2)  ;;  %v147_v8 = vld [vmem:[%s2170_s1 + $0x28] sm:$0xff] (!%p113_p2)  ;;  %vm235_vm0 = vcmask (!%p113_p2), 1041408   ;;  %vm216_vm1 = vcmask (!%p113_p2), 408576  }
   0x7   : > { %v1753_v6 = vpack.c.bf16 (!%p113_p2), %v145_v5, %v144_v2  ;;  %v1757_v10 = vpack.c.bf16 (!%p113_p2), %v147_v8, %v146_v7  ;;  %v148_v15 = vld [vmem:[%s2170_s1 + $0x30] sm:$0x3] (!%p113_p2)  ;;  %v149_v18 = vld [vmem:[%s2170_s1 + $0x38] sm:$0xff] (!%p113_p2)  ;;  %v150_v19 = vld [vmem:[%s2170_s1 + $0x40] sm:$0xff] (!%p113_p2)  ;;  %v179_v22 = vand.u32 (!%p113_p2), 127, %v178_v21  ;;  %v1891_v35 = vmov (!%p113_p2), 0.0|0.0  }
   0x8   : > { %1750 = vmatprep.subr.bf16.mxu0 (!%p113_p2), %v1749_v4  ;;  %v1761_v20 = vpack.c.bf16 (!%p113_p2), %v150_v19, %v149_v18  ;;  %v151_v36 = vld [vmem:[%s2170_s1 + $0x48] sm:$0xff] (!%p113_p2)  ;;  %v152_v37 = vld [vmem:[%s2170_s1 + $0x50] sm:$0xff] (!%p113_p2)  ;;  %vm1892_vm8 = vmmov (!%p113_p2), 0   ;;  %vm338_vm9 = vcmask (!%p113_p2), 130048   ;;  %v1534_v45 = vld [vmem:[%s2170_s1 + $0x58] ss:$0 sm:$0xff] (!%p113_p2) }
   0x9   : > { %1752 = vmatpush3.bf16.msra.mxu0 (!%p113_p2), %v1749_v4  ;;  %v1978_v38 = vpack.c.bf16 (!%p113_p2), %v152_v37, %v151_v36  ;;  %v2013_v57 = vld [vmem:[%s2170_s1 + $0x60] ss:$0 sm:$0xff] (!%p113_p2)  ;;  %s1893_s18 = smov (!%p113_p2), 96   ;;  %s1896_s6 = smov (!%p113_p2), 64   ;;  %vm1287_vm10 = vcmask (!%p113_p2), 261120   ;;  %vm1445_vm12 = vcmask (!%p113_p2), 32768  }
   0xa   : > { %1754 = vmatprep.subr.bf16.mxu0 (!%p113_p2), %v1753_v6  ;;  %1762 = vmatprep.subr.bf16.mxu1 (!%p113_p2), %v1761_v20 }
   0xb   : > { %1764 = vmatpush3.bf16.msra.mxu1 (!%p113_p2), %v1761_v20 }
   0xc   : > { %1765 = vmatprep.subr.bf16.mxu1 (!%p113_p2), %v1891_v35 }
   0xd   : > { %s2173_s10 = smov (!%p133_p3, %s1514_s10), 7  ;;  %1756 = vmatpush3.bf16.msra.mxu0 %v1753_v6 }
   0xe   : > { %s1802_s19 = smul.u32 48, %s2173_s10  ;;  %s1520_s20 = sshll.u32 %s2173_s10, 3  ;;  %1758 = vmatprep.subr.bf16.mxu0 %v1757_v10 }
   0xf   : > { %s1935_s23 = scalar_lea.vmem %s2171_s2, %s1520_s20  ;;  %s1895_s20 = smov 112  }
  0x10   : > { %s137_s30 = scalar_lea.vmem %s2169_s0, %s1802_s19  ;;  %1459 = vst [vmem:[%s1935_s23] sm:$0xff] %v1890_v9  ;;  %s1894_s19 = smov 32  }
  0x11   : > { %v174_v11 = vld [vmem:[%s137_s30 + $0x10] sm:$0xff]  ;;  %v172_v12 = vld [vmem:[%s137_s30] sm:$0xff]  ;;  %v175_v13 = vld [vmem:[%s137_s30 + $0x18] sm:$0xff]  ;;  %1760 = vmatpush3.bf16.msra.mxu0 %v1757_v10 }
  0x12   : > { %187 = vperm.xlu1 %1820, %v174_v11   ;;  %181 = vperm.xlu0 %1819, %v172_v12   ;;  %v173_v14 = vld [vmem:[%s137_s30 + $0x8] sm:$0xff]  ;;  %v176_v17 = vld [vmem:[%s137_s30 + $0x20] sm:$0xff] }
  0x13   : > { %v177_v16 = vld [vmem:[%s137_s30 + $0x28] sm:$0xff]  ;;  %1641 = vmatprep.subr.msk.mxu0 %vm235_vm0, %v148_v15 }
  0x15   : > { %1642 = vmatpush3.msk.msra.mxu0 %vm235_vm0, %v148_v15 }
  0x16   : > { %190 = vperm.xlu1 %1820, %v175_v13   ;;  %184 = vperm.xlu0 %1819, %v173_v14  }
  0x17   : > { %1774 = vmatprep.subr.bf16.mxu0 %v1891_v35 }
  0x1a   : > { %196 = vperm.xlu1 %1820, %v177_v16   ;;  %193 = vperm.xlu0 %1819, %v176_v17  }
  0x91   : > { %v188_v23 = vpop.permute.xlu1 %187  ;;  %v182_v24 = vpop.permute.xlu0 %181 }
  0x92   : > { %vm198_vm2 = vcmp.eq.s32.totalorder %v179_v22, %v182_v24  ;;  %vm200_vm3 = vcmp.eq.s32.totalorder %v179_v22, %v188_v23 }
  0x93   : > { %v1521_v25 = vsel %vm198_vm2, 1.0, %v1890_v9  ;;  %v1523_v28 = vsel %vm200_vm3, 1.0, %v1890_v9 }
  0x94   : > { %1643 = vmatprep.mubr.msk.f32.mxu0 %vm216_vm1, %v1521_v25 }
  0x95   : > { %v191_v26 = vpop.permute.xlu1 %190  ;;  %v185_v27 = vpop.permute.xlu0 %184 }
  0x96   : > { %vm199_vm4 = vcmp.eq.s32.totalorder %v179_v22, %v185_v27  ;;  %vm201_vm5 = vcmp.eq.s32.totalorder %v179_v22, %v191_v26 }
  0x97   : > { %v1522_v29 = vsel %vm199_vm4, 1.0, %v1890_v9  ;;  %v1524_v32 = vsel %vm201_vm5, 1.0, %v1890_v9 }
  0x98   : > { %1644 = vmatmul.mubr.msk.f32.vlgmr.msra.gmra.mrb[0].mxu0 %vm216_vm1, %v1522_v29 }
  0x99   : > { %v197_v30 = vpop.permute.xlu1 %196  ;;  %1646 = vmatprep.mubr.msk.f32.mxu0 %vm216_vm1, %v1523_v28  ;;  %v194_v31 = vpop.permute.xlu0 %193  ;;  %1776 = vmatpush3.bf16.msra.mxu0 %v1978_v38 }
  0x9a   : > { %vm202_vm6 = vcmp.eq.s32.totalorder %v179_v22, %v194_v31  ;;  %vm203_vm7 = vcmp.eq.s32.totalorder %v179_v22, %v197_v30  ;;  %1780 = vmatprep.subr.bf16.mxu0 %v1891_v35 }
  0x9b   : > { %v1525_v33 = vsel %vm202_vm6, 1.0, %v1890_v9  ;;  %v1526_v34 = vsel %vm203_vm7, 1.0, %v1890_v9 }
  0x9c   : > { %1647 = vmatmul.mubr.msk.f32.gmra.mrb[2].mxu0 %vm216_vm1, %v1524_v32 }
  0x9d   : > { %1649 = vmatprep.mubr.msk.f32.mxu0 %vm216_vm1, %v1525_v33 }
  0xa0   : > { %1650 = vmatmul.mubr.msk.f32.gmra.mrb[4].mxu0 %vm216_vm1, %v1526_v34 }
  0xa1   : > { %1690 = vmatprep.mubr.msk.f32.mxu0 %vm1892_vm8, %v1890_v9 }
 0x16b   : > { %v1645_v39 = vpop.f32.mrb[0].mxu0 }
 0x16c   : > { %v305_v40 = vpop.f32.mrb[1].mxu0 }
 0x16d   : > { %1656 = vmatprep.mubr.msk.f32.mxu1 %vm338_vm9, %v305_v40 }
 0x16e   : > { %1657 = vmatmul.mubr.msk.f32.vlgmr.msra.gmra.mrb[0].mxu1 %vm338_vm9, %v1645_v39 }
 0x16f   : > { %1767 = vmatpush3.bf16.msra.mxu1 %v1978_v38  ;;  %v1648_v41 = vpop.f32.mrb[2].mxu0 }
 0x170   : > { %v315_v42 = vpop.f32.mrb[3].mxu0  ;;  %1768 = vmatprep.subr.bf16.mxu1 %v1891_v35 }
 0x171   : > { %1659 = vmatprep.mubr.msk.f32.mxu1 %vm338_vm9, %v315_v42 }
 0x172   : > { %1660 = vmatmul.mubr.msk.f32.gmra.mrb[2].mxu1 %vm338_vm9, %v1648_v41 }
 0x173   : > { %v1651_v43 = vpop.f32.mrb[4].mxu0 }
 0x174   : > { %v325_v44 = vpop.f32.mrb[5].mxu0 }
 0x175   : > { %1662 = vmatprep.mubr.msk.f32.mxu1 %vm338_vm9, %v325_v44 }
 0x176   : > { %1663 = vmatmul.mubr.msk.f32.gmra.mrb[4].mxu1 %vm338_vm9, %v1651_v43 }
 0x177   : > { %1669 = vmatprep.mubr.msk.f32.mxu1 %vm1892_vm8, %v1890_v9 }
 0x17a   : > { %1670 = vmatmul.mubr.f32.vlgmr.msra.gmra.mrb[6].mxu1 %v1890_v9 }
 0x17b   : > { %1770 = vmatpush3.bf16.msra.mxu1 %v1978_v38  ;;  %1676 = vmatprep.mubr.msk.f32.mxu1 %vm1892_vm8, %v1890_v9 }
 0x17c   : > { %1771 = vmatprep.subr.bf16.mxu1 %v1891_v35 }
 0x241   : > { %v1658_v46 = vpop.f32.mrb[0].mxu1 }
 0x242   : > { %v429_v47 = vadd.f32 %v1658_v46, %v1534_v45  ;;  %v423_v48 = vpop.f32.mrb[1].mxu1 }
 0x243   : > { %v424_v61 = vadd.f32 %v1534_v45, %v423_v48 }
 0x245   : > { %v1661_v49 = vpop.f32.mrb[2].mxu1 }
 0x246   : > { %v2002_v50 = vadd.f32 %v1661_v49, %v1534_v45  ;;  %v433_v51 = vpop.f32.mrb[3].mxu1 }
 0x247   : > { %v2004_v52 = vadd.f32 %v1534_v45, %v433_v51 }
 0x249   : > { %v1664_v53 = vpop.f32.mrb[4].mxu1 }
 0x24a   : > { %v2006_v54 = vadd.f32 %v1664_v53, %v1534_v45  ;;  %v443_v55 = vpop.f32.mrb[5].mxu1 }
 0x24b   : > { %v2008_v56 = vadd.f32 %v1534_v45, %v443_v55 }
 0x24d   : > { %v525_v58 = vpop.f32.mrb[6].mxu1 }
 0x24e   : > { %v526_v59 = vadd.f32 %v2013_v57, %v525_v58  ;;  %v1671_v60 = vpop.f32.mrb[7].mxu1 }
 0x250   : > { %537 = vrot.lane.b32.xlu0 %v526_v59, %s1893_s18  ;;  %v529_v62 = vadd.f32 %v526_v59, %v424_v61 }
 0x252   : > { %v1542_v63 = vmul.f32 -1.442695, %v529_v62 }
 0x254   : > { %1821 = vpow2.f32 %v1542_v63 }
 0x25e   : > { %v1822_v0 = vpop.eup %1821 }
 0x25f   : > { %v533_v1 = vadd.f32 1.0, %v1822_v0 }
 0x261   : > { %1823 = vrcp.f32 %v533_v1 }
 0x26b   : > { %v1824_v2 = vpop.eup %1823 }
 0x26c   : > { %v547_v8 = vsub.f32 1.0, %v1824_v2  ;;  %v553_v11 = vmul.f32 0.0, %v1824_v2 }
 0x2c2   : > { %v538_v3 = vpop.permute.xlu0 %537 }
 0x2c3   : > { %v540_v4 = vmul.f32 %v1824_v2, %v538_v3 }
 0x2c5   : > { %542 = vrot.lane.b32.xlu1 %v540_v4, %s1894_s19 }
 0x337   : > { %v543_v5 = vpop.permute.xlu1 %542 }
 0x338   : > { %v545_v6 = vadd.f32 %v543_v5, %v424_v61 }
 0x33a   : > { %1825 = vtanh.f32 %v545_v6 }
 0x344   : > { %v1826_v7 = vpop.eup %1825 }
 0x345   : > { %549 = vrot.lane.b32.xlu0 %v1826_v7, %s1895_s20 }
 0x3b7   : > { %v550_v10 = vpop.permute.xlu0 %549 }
 0x3b8   : > { %v552_v12 = vmul.f32 %v550_v10, %v547_v8  ;;  %v159_v8 = vld [vmem:[%s2170_s1 + $0x88] sm:$0xff]  ;;  %v160_v10 = vld [vmem:[%s2170_s1 + $0x90] sm:$0xff] }
 0x3ba   : > { %v554_v13 = vadd.f32 %v553_v11, %v552_v12  ;;  %v1783_v11 = vpack.c.bf16 %v160_v10, %v159_v8 }
 0x3bc   : > { %556 = vrot.lane.b32.xlu1 %v554_v13, %s1895_s20 }
 0x42e   : > { %v2020_v14 = vpop.permute.xlu1 %556 }
 0x42f   : > { %1677 = vmatmul.mubr.msk.f32.vlgmr.msra.gmra.mrb[8].mxu1 %vm338_vm9, %v2020_v14 }
 0x430   : > { %1773 = vmatpush3.bf16.msra.mxu1 %v1978_v38  ;;  %1683 = vmatprep.mubr.msk.f32.mxu1 %vm1892_vm8, %v1890_v9 }
 0x431   : > { %1777 = vmatprep.subr.bf16.mxu1 %v1891_v35 }
 0x502   : > { %v626_v15 = vpop.f32.mrb[8].mxu1 }
 0x503   : > { %v627_v16 = vadd.f32 %v2013_v57, %v626_v15  ;;  %v1678_v17 = vpop.f32.mrb[9].mxu1 }
 0x505   : > { %638 = vrot.lane.b32.xlu0 %v627_v16, %s1893_s18  ;;  %v630_v18 = vadd.f32 %v627_v16, %v429_v47 }
 0x507   : > { %v1544_v19 = vmul.f32 -1.442695, %v630_v18 }
 0x509   : > { %1827 = vpow2.f32 %v1544_v19 }
 0x513   : > { %v1828_v20 = vpop.eup %1827 }
 0x514   : > { %v634_v22 = vadd.f32 1.0, %v1828_v20 }
 0x516   : > { %1829 = vrcp.f32 %v634_v22  ;;  %v2077_v22 = vld [vmem:[%s2170_s1 + $0x98] ss:$0 sm:$0xff] }
 0x520   : > { %v1830_v23 = vpop.eup %1829 }
 0x521   : > { %v648_v29 = vsub.f32 1.0, %v1830_v23  ;;  %v654_v31 = vmul.f32 %v1830_v23, %v554_v13 }
 0x577   : > { %v639_v24 = vpop.permute.xlu0 %638 }
 0x578   : > { %v641_v25 = vmul.f32 %v1830_v23, %v639_v24 }
 0x57a   : > { %643 = vrot.lane.b32.xlu1 %v641_v25, %s1894_s19 }
 0x5ec   : > { %v644_v26 = vpop.permute.xlu1 %643 }
 0x5ed   : > { %v646_v27 = vadd.f32 %v644_v26, %v429_v47 }
 0x5ef   : > { %1831 = vtanh.f32 %v646_v27 }
 0x5f9   : > { %v1832_v28 = vpop.eup %1831 }
 0x5fa   : > { %650 = vrot.lane.b32.xlu0 %v1832_v28, %s1895_s20 }
 0x66c   : > { %v651_v30 = vpop.permute.xlu0 %650 }
 0x66d   : > { %v653_v32 = vmul.f32 %v651_v30, %v648_v29 }
 0x66f   : > { %v655_v33 = vadd.f32 %v654_v31, %v653_v32 }
 0x671   : > { %657 = vrot.lane.b32.xlu1 %v655_v33, %s1895_s20 }
 0x6e3   : > { %v2033_v34 = vpop.permute.xlu1 %657 }
 0x6e4   : > { %1684 = vmatmul.mubr.msk.f32.vlgmr.msra.gmra.mrb[10].mxu1 %vm338_vm9, %v2033_v34 }
 0x6e5   : > { %1779 = vmatpush3.bf16.msra.mxu1 %v1978_v38  ;;  %1697 = vmatprep.mubr.msk.f32.mxu1 %vm1892_vm8, %v1890_v9 }
 0x6e6   : > { %1784 = vmatprep.subr.bf16.mxu1 %v1783_v11 }
 0x7b7   : > { %v727_v36 = vpop.f32.mrb[10].mxu1 }
 0x7b8   : > { %v728_v37 = vadd.f32 %v2013_v57, %v727_v36  ;;  %v1685_v39 = vpop.f32.mrb[11].mxu1 }
 0x7ba   : > { %739 = vrot.lane.b32.xlu0 %v728_v37, %s1893_s18  ;;  %v731_v40 = vadd.f32 %v728_v37, %v2004_v52 }
 0x7bc   : > { %v1546_v41 = vmul.f32 -1.442695, %v731_v40 }
 0x7be   : > { %1833 = vpow2.f32 %v1546_v41 }
 0x7c8   : > { %v1834_v42 = vpop.eup %1833 }
 0x7c9   : > { %v735_v43 = vadd.f32 1.0, %v1834_v42 }
 0x7cb   : > { %1835 = vrcp.f32 %v735_v43 }
 0x7d5   : > { %v1836_v44 = vpop.eup %1835 }
 0x7d6   : > { %v749_v51 = vsub.f32 1.0, %v1836_v44  ;;  %v755_v55 = vmul.f32 %v1836_v44, %v655_v33 }
 0x82c   : > { %v740_v45 = vpop.permute.xlu0 %739 }
 0x82d   : > { %v742_v46 = vmul.f32 %v1836_v44, %v740_v45 }
 0x82f   : > { %744 = vrot.lane.b32.xlu1 %v742_v46, %s1894_s19 }
 0x8a1   : > { %v745_v47 = vpop.permute.xlu1 %744 }
 0x8a2   : > { %v747_v48 = vadd.f32 %v745_v47, %v2004_v52 }
 0x8a4   : > { %1837 = vtanh.f32 %v747_v48 }
 0x8ae   : > { %v1838_v49 = vpop.eup %1837 }
 0x8af   : > { %751 = vrot.lane.b32.xlu0 %v1838_v49, %s1895_s20 }
 0x921   : > { %v752_v53 = vpop.permute.xlu0 %751 }
 0x922   : > { %v754_v58 = vmul.f32 %v752_v53, %v749_v51 }
 0x924   : > { %v756_v59 = vadd.f32 %v755_v55, %v754_v58 }
 0x926   : > { %758 = vrot.lane.b32.xlu1 %v756_v59, %s1895_s20 }
 0x998   : > { %v759_v60 = vpop.permute.xlu1 %758 }
 0x999   : > { %1691 = vmatmul.mubr.msk.f32.vlgmr.msra.gmra.mrb[6].mxu0 %vm338_vm9, %v759_v60 }
 0x99a   : > { %1782 = vmatpush3.bf16.msra.mxu0 %v1978_v38  ;;  %1704 = vmatprep.mubr.msk.f32.mxu0 %vm1892_vm8, %v1890_v9 }
 0x99b   : > { %1787 = vmatprep.subr.bf16.mxu0 %v1891_v35 }
 0xa6c   : > { %v828_v52 = vpop.f32.mrb[6].mxu0 }
 0xa6d   : > { %v829_v61 = vadd.f32 %v2013_v57, %v828_v52  ;;  %v1692_v62 = vpop.f32.mrb[7].mxu0 }
 0xa6f   : > { %840 = vrot.lane.b32.xlu0 %v829_v61, %s1893_s18  ;;  %v832_v63 = vadd.f32 %v829_v61, %v2002_v50 }
 0xa71   : > { %v1548_v0 = vmul.f32 -1.442695, %v832_v63 }
 0xa73   : > { %1839 = vpow2.f32 %v1548_v0 }
 0xa7d   : > { %v1840_v1 = vpop.eup %1839 }
 0xa7e   : > { %v836_v2 = vadd.f32 1.0, %v1840_v1 }
 0xa80   : > { %1841 = vrcp.f32 %v836_v2 }
 0xa8a   : > { %v1842_v3 = vpop.eup %1841 }
 0xa8b   : > { %v850_v12 = vsub.f32 1.0, %v1842_v3  ;;  %v856_v15 = vmul.f32 %v1842_v3, %v756_v59 }
 0xae1   : > { %v841_v38 = vpop.permute.xlu0 %840 }
 0xae2   : > { %v843_v4 = vmul.f32 %v1842_v3, %v841_v38 }
 0xae4   : > { %845 = vrot.lane.b32.xlu1 %v843_v4, %s1894_s19 }
 0xb56   : > { %v846_v5 = vpop.permute.xlu1 %845 }
 0xb57   : > { %v848_v6 = vadd.f32 %v846_v5, %v2002_v50 }
 0xb59   : > { %1843 = vtanh.f32 %v848_v6 }
 0xb63   : > { %v1844_v7 = vpop.eup %1843 }
 0xb64   : > { %852 = vrot.lane.b32.xlu0 %v1844_v7, %s1895_s20 }
 0xbd6   : > { %v853_v13 = vpop.permute.xlu0 %852 }
 0xbd7   : > { %v855_v16 = vmul.f32 %v853_v13, %v850_v12  ;;  %v156_v12 = vld [vmem:[%s2170_s1 + $0x70] sm:$0xff] }
 0xbd9   : > { %v857_v17 = vadd.f32 %v856_v15, %v855_v16  ;;  %v1562_v15 = vld [vmem:[%s2170_s1 + $0x80] ss:$0 sm:$0xff] }
 0xbdb   : > { %859 = vrot.lane.b32.xlu1 %v857_v17, %s1895_s20 }
 0xc4d   : > { %v860_v50 = vpop.permute.xlu1 %859 }
 0xc4e   : > { %1698 = vmatmul.mubr.msk.f32.vlgmr.msra.gmra.mrb[12].mxu1 %vm338_vm9, %v860_v50 }
 0xc4f   : > { %1786 = vmatpush3.bf16.msra.mxu1 %v1783_v11  ;;  %1711 = vmatprep.mubr.msk.f32.mxu1 %vm338_vm9, %v2020_v14 }
 0xc50   : > { %1796 = vmatprep.subr.bf16.mxu1 %v1891_v35 }
 0xc52   : > { %1712 = vmatmul.mubr.msk.f32.vlgmr.msra.gmra.mrb[14].mxu1 %vm338_vm9, %v2033_v34 }
 0xc53   : > { %1714 = vmatprep.mubr.msk.f32.mxu1 %vm338_vm9, %v759_v60 }
 0xc56   : > { %1715 = vmatmul.mubr.msk.f32.gmra.mrb[16].mxu1 %vm338_vm9, %v860_v50 }
 0xd21   : > { %v929_v18 = vpop.f32.mrb[12].mxu1 }
 0xd22   : > { %v930_v19 = vadd.f32 %v2013_v57, %v929_v18  ;;  %v1699_v20 = vpop.f32.mrb[13].mxu1 }
 0xd24   : > { %941 = vrot.lane.b32.xlu0 %v930_v19, %s1893_s18  ;;  %v933_v39 = vadd.f32 %v930_v19, %v2008_v56 }
 0xd25   : > { %v1713_v14 = vpop.f32.mrb[14].mxu1 }
 0xd26   : > { %v1141_v23 = vadd.f32 %v1713_v14, %v2077_v22  ;;  %v1135_v24 = vpop.f32.mrb[15].mxu1  ;;  %v1550_v40 = vmul.f32 -1.442695, %v933_v39  ;;  %v164_v39 = vld [vmem:[%s2170_s1 + $0xb0] sm:$0xff] }
 0xd27   : > { %v1136_v25 = vadd.f32 %v2077_v22, %v1135_v24  ;;  %v1560_v24 = vld [vmem:[%s2170_s1 + $0x78] ss:$0 sm:$0xff] }
 0xd28   : > { %1845 = vtanh.f32 %v1141_v23 }
 0xd29   : > { %v1716_v26 = vpop.f32.mrb[16].mxu1  ;;  %1847 = vtanh.f32 %v1136_v25 }
 0xd2a   : > { %v1145_v27 = vpop.f32.mrb[17].mxu1  ;;  %v1151_v28 = vadd.f32 %v1716_v26, %v2077_v22 }
 0xd2b   : > { %v1146_v29 = vadd.f32 %v2077_v22, %v1145_v27 }
 0xd2d   : > { %1849 = vtanh.f32 %v1146_v29 }
 0xd2e   : > { %1851 = vtanh.f32 %v1151_v28 }
 0xd2f   : > { %1853 = vpow2.f32 %v1550_v40 }
 0xd32   : > { %v1846_v30 = vpop.eup %1845 }
 0xd33   : > { %v1848_v31 = vpop.eup %1847 }
 0xd34   : > { %v1170_v32 = vadd.f32 %v1848_v31, %v1846_v30 }
 0xd37   : > { %v1850_v33 = vpop.eup %1849 }
 0xd38   : > { %v1171_v34 = vadd.f32 %v1850_v33, %v1170_v32  ;;  %v1852_v36 = vpop.eup %1851 }
 0xd39   : > { %v1854_v41 = vpop.eup %1853 }
 0xd3a   : > { %v2084_v37 = vadd.f32 %v1852_v36, %v1171_v34  ;;  %v937_v42 = vadd.f32 1.0, %v1854_v41  ;;  %v165_v41 = vld [vmem:[%s2170_s1 + $0xb8] sm:$0xff] }
 0xd3c   : > { %1855 = vrcp.f32 %v937_v42  ;;  %v1794_v42 = vpack.c.bf16 %v165_v41, %v164_v39 }
 0xd46   : > { %v1856_v43 = vpop.eup %1855 }
 0xd47   : > { %v951_v49 = vsub.f32 1.0, %v1856_v43  ;;  %v957_v53 = vmul.f32 %v1856_v43, %v857_v17 }
 0xd96   : > { %v942_v44 = vpop.permute.xlu0 %941 }
 0xd97   : > { %v944_v45 = vmul.f32 %v1856_v43, %v942_v44 }
 0xd99   : > { %946 = vrot.lane.b32.xlu1 %v944_v45, %s1894_s19 }
 0xe0b   : > { %v947_v46 = vpop.permute.xlu1 %946 }
 0xe0c   : > { %v949_v47 = vadd.f32 %v947_v46, %v2008_v56 }
 0xe0e   : > { %1857 = vtanh.f32 %v949_v47 }
 0xe18   : > { %v1858_v48 = vpop.eup %1857 }
 0xe19   : > { %953 = vrot.lane.b32.xlu0 %v1858_v48, %s1895_s20  ;;  %v167_v48 = vld [vmem:[%s2170_s1 + $0xc8] sm:$0xff] }
 0xe8b   : > { %v954_v51 = vpop.permute.xlu0 %953 }
 0xe8c   : > { %v956_v55 = vmul.f32 %v954_v51, %v951_v49  ;;  %v168_v49 = vld [vmem:[%s2170_s1 + $0xd0] sm:$0xff] }
 0xe8d   : > { %v1797_v51 = vpack.c.bf16 %v168_v49, %v167_v48 }
 0xe8e   : > { %v958_v58 = vadd.f32 %v957_v53, %v956_v55  ;;  %v169_v53 = vld [vmem:[%s2170_s1 + $0xd8] sm:$0xff]  ;;  %v170_v55 = vld [vmem:[%s2170_s1 + $0xe0] sm:$0xff] }
 0xe8f   : > { %1798 = vmatpush3.bf16.msra.mxu1 %v1797_v51 }
 0xe90   : > { %960 = vrot.lane.b32.xlu1 %v958_v58, %s1895_s20  ;;  %1799 = vmatprep.subr.bf16.mxu1 %v1891_v35 }
 0xf02   : > { %v961_v59 = vpop.permute.xlu1 %960 }
 0xf03   : > { %1705 = vmatmul.mubr.msk.f32.vlgmr.msra.gmra.mrb[8].mxu0 %vm338_vm9, %v961_v59  ;;  %1717 = vmatprep.mubr.msk.f32.mxu1 %vm338_vm9, %v961_v59  ;;  %v1564_v59 = vld [vmem:[%s2170_s1 + $0xc0] ss:$0 sm:$0xff] }
 0xf04   : > { %1724 = vmatprep.mubr.msk.f32.mxu0 %vm1892_vm8, %v1890_v9 }
 0xfd6   : > { %v1030_v56 = vpop.f32.mrb[8].mxu0 }
 0xfd7   : > { %v1031_v60 = vadd.f32 %v2013_v57, %v1030_v56  ;;  %v1706_v52 = vpop.f32.mrb[9].mxu0 }
 0xfd9   : > { %1042 = vrot.lane.b32.xlu0 %v1031_v60, %s1893_s18  ;;  %v1034_v61 = vadd.f32 %v1031_v60, %v2006_v54 }
 0xfdb   : > { %v1552_v62 = vmul.f32 -1.442695, %v1034_v61 }
 0xfdd   : > { %1859 = vpow2.f32 %v1552_v62 }
 0xfe7   : > { %v1860_v63 = vpop.eup %1859 }
 0xfe8   : > { %v1038_v0 = vadd.f32 1.0, %v1860_v63 }
 0xfea   : > { %1861 = vrcp.f32 %v1038_v0 }
 0xff4   : > { %v1862_v1 = vpop.eup %1861 }
 0xff5   : > { %v1052_v5 = vsub.f32 1.0, %v1862_v1  ;;  %v1058_v7 = vmul.f32 %v1862_v1, %v958_v58  ;;  %v1800_v58 = vpack.c.bf16 %v170_v55, %v169_v53 }
 0xff7   : > { %1801 = vmatpush3.bf16.msra.mxu1 %v1800_v58 }
0x104b   : > { %v1043_v2 = vpop.permute.xlu0 %1042 }
0x104c   : > { %v1045_v3 = vmul.f32 %v1862_v1, %v1043_v2 }
0x104e   : > { %1047 = vrot.lane.b32.xlu1 %v1045_v3, %s1894_s19 }
0x10c0   : > { %v1048_v38 = vpop.permute.xlu1 %1047 }
0x10c1   : > { %v1050_v4 = vadd.f32 %v1048_v38, %v2006_v54  ;;  %v155_v54 = vld [vmem:[%s2170_s1 + $0x68] sm:$0xff] }
0x10c2   : > { %v1788_v13 = vpack.c.bf16 %v156_v12, %v155_v54 }
0x10c3   : > { %1863 = vtanh.f32 %v1050_v4 }
0x10c4   : > { %1789 = vmatpush3.bf16.msra.mxu0 %v1788_v13 }
0x10c5   : > { %1790 = vmatprep.subr.bf16.mxu0 %v1891_v35 }
0x10cd   : > { %v1864_v57 = vpop.eup %1863 }
0x10ce   : > { %1054 = vrot.lane.b32.xlu0 %v1864_v57, %s1895_s20  ;;  %v171_v57 = vld [vmem:[%s2170_s1 + $0xe8] sm:$0x1] }
0x10d2   : > { %1264 = vrot.lane.b32.xlu0 %v1562_v15, %s1896_s6 }
0x1140   : > { %v1055_v6 = vpop.permute.xlu0 %1054 }
0x1141   : > { %v1057_v8 = vmul.f32 %v1055_v6, %v1052_v5 }
0x1143   : > { %v1059_v10 = vadd.f32 %v1058_v7, %v1057_v8 }
0x1144   : > { %v1265_v31 = vpop.permute.xlu0 %1264 }
0x1145   : > { %1065 = vrot.lane.b32.xlu1 %v1059_v10, %s1895_s20 }
0x11b7   : > { %v1066_v11 = vpop.permute.xlu1 %1065 }
0x11b8   : > { %1718 = vmatmul.mubr.msk.f32.gmra.mrb[18].mxu1 %vm338_vm9, %v1066_v11 }
0x11b9   : > { %1746 = vmatprep.mubr.msk.f32.mxu1 %vm1892_vm8, %v1890_v9 }
0x128b   : > { %v1719_v16 = vpop.f32.mrb[18].mxu1 }
0x128c   : > { %v1155_v17 = vpop.f32.mrb[19].mxu1  ;;  %v1161_v50 = vadd.f32 %v1719_v16, %v2077_v22 }
0x128d   : > { %v1156_v18 = vadd.f32 %v2077_v22, %v1155_v17 }
0x128f   : > { %1865 = vtanh.f32 %v1156_v18 }
0x1290   : > { %1867 = vtanh.f32 %v1161_v50 }
0x1299   : > { %v1866_v19 = vpop.eup %1865 }
0x129a   : > { %v1173_v20 = vadd.f32 %v1866_v19, %v2084_v37  ;;  %v1868_v14 = vpop.eup %1867  ;;  %v163_v37 = vld [vmem:[%s2170_s1 + $0xa8] sm:$0xff] }
0x129c   : > { %v1174_v23 = vadd.f32 %v1868_v14, %v1173_v20 }
0x129e   : > { %1725 = vmatmul.mubr.msk.f32.vlgmr.msra.gmra.mrb[10].mxu0 %vm338_vm9, %v1174_v23 }
0x129f   : > { %1735 = vmatprep.mubr.msk.f32.mxu0 %vm1892_vm8, %v1890_v9  ;;  %v162_v9 = vld [vmem:[%s2170_s1 + $0xa0] sm:$0xff] }
0x12a0   : > { %v1791_v40 = vpack.c.bf16 %v163_v37, %v162_v9 }
0x12a2   : > { %1792 = vmatpush3.bf16.msra.mxu0 %v1791_v40 }
0x12a3   : > { %1793 = vmatprep.subr.bf16.mxu0 %v1891_v35  ;;  %v1362_v35 = vshrl.u32 %v178_v21, 7 }
0x12a5   : > { %vm1363_vm11 = vcmp.lt.s32.totalorder %v1362_v35, 4 }
0x12a6   : > { %1795 = vmatpush3.bf16.msra.mxu0 %v1794_v42 }
0x1371   : > { %v1248_v25 = vpop.f32.mrb[10].mxu0 }
0x1372   : > { %v1249_v26 = vadd.f32 %v1560_v24, %v1248_v25  ;;  %v1726_v27 = vpop.f32.mrb[11].mxu0 }
0x1374   : > { %v1256_v22 = vadd.f32 %v1562_v15, %v1249_v26 }
0x1376   : > { %v1563_v28 = vmul.f32 -1.442695, %v1256_v22 }
0x1378   : > { %1869 = vpow2.f32 %v1563_v28 }
0x1382   : > { %v1870_v29 = vpop.eup %1869 }
0x1383   : > { %v1260_v30 = vadd.f32 1.0, %v1870_v29 }
0x1385   : > { %1871 = vrcp.f32 %v1260_v30 }
0x138f   : > { %v1872_v32 = vpop.eup %1871 }
0x1390   : > { %v1267_v33 = vmul.f32 %v1872_v32, %v1265_v31  ;;  %v1274_v44 = vsub.f32 1.0, %v1872_v32 }
0x1392   : > { %1269 = vrot.lane.b32.xlu1 %v1267_v33, %s1896_s6 }
0x1404   : > { %v1270_v34 = vpop.permute.xlu1 %1269 }
0x1405   : > { %v1272_v36 = vadd.f32 %v1270_v34, %v1249_v26 }
0x1407   : > { %1873 = vtanh.f32 %v1272_v36 }
0x1411   : > { %v1874_v43 = vpop.eup %1873 }
0x1412   : > { %1276 = vrot.lane.b32.xlu0 %v1874_v43, %s1893_s18 }
0x1484   : > { %v1277_v45 = vpop.permute.xlu0 %1276 }
0x1485   : > { %v1279_v46 = vmul.f32 %v1277_v45, %v1274_v44 }
0x1487   : > { %1285 = vrot.lane.b32.xlu1 %v1279_v46, %s1893_s18 }
0x14f9   : > { %v1286_v47 = vpop.permute.xlu1 %1285 }
0x14fa   : > { %1736 = vmatmul.mubr.msk.f32.vlgmr.msra.gmra.mrb[12].mxu0 %vm1287_vm10, %v1286_v47 }
0x15cd   : > { %v1356_v56 = vpop.f32.mrb[12].mxu0 }
0x15ce   : > { %v1357_v60 = vadd.f32 %v1564_v59, %v1356_v56  ;;  %v1737_v52 = vpop.f32.mrb[13].mxu0 }
0x15d0   : > { %1875 = vtanh.f32 %v1357_v60 }
0x15da   : > { %v1876_v61 = vpop.eup %1875 }
0x15db   : > { %v1364_v62 = vsel %vm1363_vm11, %v1876_v61, 0.0 }
0x15dc   : > { %v1365_v63 = vsel %vm1287_vm10, %v1364_v62, 0.0 }
0x15dd   : > { %v1366_v0 = vrot.slane %v1365_v63, 4 }
0x15df   : > { %v1367_v1 = vadd.f32 %v1366_v0, %v1365_v63 }
0x15e1   : > { %v1368_v2 = vrot.slane %v1367_v1, 2 }
0x15e3   : > { %v1369_v3 = vadd.f32 %v1368_v2, %v1367_v1 }
0x15e5   : > { %v1370_v38 = vrot.slane %v1369_v3, 1 }
0x15e7   : > { %v1371_v4 = vadd.f32 %v1370_v38, %v1369_v3 }
0x15e9   : > { %1747 = vmatmul.mubr.msk.f32.vlgmr.msra.gmra.mrb[20].mxu1 %vm1287_vm10, %v1371_v4 }
0x16bc   : > { %v1441_v5 = vpop.f32.mrb[20].mxu1 }
0x16bd   : > { %v1442_v21 = vadd.f32 %v1441_v5, %v171_v57  ;;  %v1748_v6 = vpop.f32.mrb[21].mxu1 }
0x16bf   : > { %v1446_v7 = vsel %vm1445_vm12, %v1442_v21, -inf }
0x16c0   : > { %1447 = vmax.xlane.f32.xlu0 %v1446_v7 }
0x174d   : > { %v1448_v8 = vpop.xlane.xlu0 %1447 }
0x174e   : > { %v1449_v10 = vsub.f32 %v1442_v21, %v1448_v8 }
0x1750   : > { %v1450_v11 = vmul.f32 1.442695, %v1449_v10 }
0x1752   : > { %1877 = vpow2.f32 %v1450_v11 }
0x175c   : > { %v1878_v54 = vpop.eup %1877 }
0x175d   : > { %v1452_v12 = vsel %vm1445_vm12, %v1878_v54, 0.0 }
0x175e   : > { %1453 = vadd.xlane.f32.xlu1 %v1452_v12 }
0x17eb   : > { %v1454_v13 = vpop.xlane.xlu1 %1453 }
0x17ec   : > { %1879 = vlog2.f32 %v1454_v13 }
0x17f6   : > { %v1880_v15 = vpop.eup %1879 }
0x17f7   : > { %v1456_v16 = vmul.f32 0.6931472, %v1880_v15 }
0x17f9   : > { %v1457_v17 = vadd.f32 %v1456_v16, %v1448_v8 }
0x17fb   : > { %v1458_v50 = vsub.f32 %v1442_v21, %v1457_v17 }
0x17fd   : > { %1460 = vst.msk [vmem:[%s1935_s23] sm:$0x1] %vm1445_vm12, %v1458_v50 }
0x17fe PF: > { %s12_s9 = sadd.s32 1, %s1887_s9  }
0x17ff   : > { %p9_p4 = scmp.ge.s32.totalorder %s12_s9, 10  }
0x1801   :  { %11 = sbr.rel (!%p9_p4) target bundleno = 1 (0x1), region = 58 }

</bundles_post_ra>
